<compile_context>
chip_gen: v6e
topology: v6e:2x2x1
jax: 0.10.0
libtpu: 0.0.40
codegen_flags: <defaults>
</compile_context>

<pallas_src>
import math

import numpy as np
import jax
import jax.numpy as jnp
from jax.experimental import pallas as pl
from jax.experimental.pallas import tpu as pltpu


def _round_up(x, m):
    return ((x + m - 1) // m) * m


# ----------------------------------------------------------------------------
# Host-side precompute of the FcaNet DCT weights (matches get_dct_weights).
# ----------------------------------------------------------------------------
def get_1d_dct(i, freq, L):
    result = math.cos(math.pi * freq * (i + 0.5) / L) / math.sqrt(L)
    if freq == 0:
        return result
    return result * math.sqrt(2)


def get_dct_weights(width, height, channel, fidx_u, fidx_v):
    w = np.zeros((channel, width, height), np.float32)
    c_part = channel // len(fidx_u)
    for i, (u_x, v_y) in enumerate(zip(fidx_u, fidx_v)):
        for t_x in range(width):
            for t_y in range(height):
                w[i * c_part:(i + 1) * c_part, t_x, t_y] = (
                    get_1d_dct(t_x, u_x, width) * get_1d_dct(t_y, v_y, height))
    return jnp.asarray(w)  # (C, H, W) when H == W


# ----------------------------------------------------------------------------
# Fused SFCA: single Pallas call, one grid step, everything resident in VMEM.
# ----------------------------------------------------------------------------
def sfca_apply(x, dct_w, w1, w2, wc):
    """SFCA forward: NCHW in -> NCHW out, fully fused in one Pallas call."""
    B, C, H, W = x.shape
    HW = H * W
    mid = w1.shape[0]

    # Free row-major reshapes: lane-dense (C, HW) slabs (HW multiple of 128).
    x_flat = x.reshape(B, C, HW)
    dct_flat = dct_w.reshape(C, HW).astype(jnp.float32)

    # Pack the three tiny weights into one (8,128)-aligned f32 slab.
    #   rows [0, mid)       cols [0, C)   : w1  (mid, C)
    #   rows [r1, r1+C)     cols [0, mid) : w2  (C, mid)
    #   rows [r2, r2+C)     col  0        : wc  stored as a column (C, 1)
    r1 = _round_up(mid, 8)
    r2 = r1 + _round_up(C, 8)
    rows = r2 + _round_up(C, 8)
    cols = max(128, _round_up(C, 128))
    pk = jnp.zeros((rows, cols), jnp.float32)
    pk = pk.at[0:mid, 0:C].set(w1.astype(jnp.float32))
    pk = pk.at[r1:r1 + C, 0:mid].set(w2.astype(jnp.float32))
    pk = pk.at[r2:r2 + C, 0:1].set(wc.reshape(C, 1).astype(jnp.float32))

    def kernel(x_ref, dct_ref, pk_ref, out_ref):
        dct = dct_ref[...]                       # (C, HW) f32
        w1_k = pk_ref[0:mid, 0:C]                # (mid, C)
        w2_k = pk_ref[r1:r1 + C, 0:mid]          # (C, mid)
        wc_col = pk_ref[r2:r2 + C, 0:1]          # (C, 1)

        # --- FCA squeeze: DCT-weighted global pooling, column form (C, B).
        #     VPU multiply + XLU lane reduce (XLU slot is otherwise idle).
        xs = []
        y_cols = []
        for b in range(B):                       # static unroll, all in VMEM
            xb = x_ref[b].astype(jnp.float32)    # (C, HW)
            xs.append(xb)
            y_cols.append(jnp.sum(xb * dct, axis=1, keepdims=True))   # (C, 1)
        y_col = jnp.concatenate(y_cols, axis=1) if B > 1 else y_cols[0]

        # --- Excitation MLP, batched across B on the lane axis (MXU).
        h = jnp.dot(w1_k, y_col, preferred_element_type=jnp.float32)  # (mid, B)
        h = jnp.maximum(h, 0.0)
        z = jnp.dot(w2_k, h, preferred_element_type=jnp.float32)      # (C, B)
        z = jax.nn.sigmoid(z)

        # --- Spatial branch + fused epilogue: out = x*z + x*con = x*(z + con).
        for b in range(B):
            xb = xs[b]                                                  # (C, HW)
            con = jax.nn.sigmoid(
                jnp.sum(xb * wc_col, axis=0, keepdims=True))            # (1, HW)
            gate = z[:, b:b + 1] + con                                  # (C, HW)
            out_ref[b] = (xb * gate).astype(out_ref.dtype)

    itemsize = jnp.dtype(x.dtype).itemsize
    cost = pl.CostEstimate(
        flops=6 * B * C * HW + 4 * B * mid * C,
        transcendentals=B * (C + HW),
        bytes_accessed=(2 * B * C * HW) * itemsize + (C * HW + rows * cols) * 4,
    )

    out = pl.pallas_call(
        kernel,
        out_shape=jax.ShapeDtypeStruct((B, C, HW), x.dtype),
        in_specs=[
            pl.BlockSpec(memory_space=pltpu.MemorySpace.VMEM),   # x slab
            pl.BlockSpec(memory_space=pltpu.MemorySpace.VMEM),   # dct weights
            pl.BlockSpec(memory_space=pltpu.MemorySpace.VMEM),   # packed w1/w2/wc
        ],
        out_specs=pl.BlockSpec(memory_space=pltpu.MemorySpace.VMEM),
        cost_estimate=cost,
    )(x_flat, dct_flat, pk)

    return out.reshape(B, C, H, W)


# ----------------------------------------------------------------------------
# Pure-JAX reference (mirrors the PyTorch module) for a correctness check.
# ----------------------------------------------------------------------------
def sfca_reference(x, dct_w, w1, w2, wc):
    y = jnp.sum(x * dct_w[None], axis=(2, 3))                  # (B, C)
    h = jnp.maximum(y @ w1.T, 0.0)                             # (B, mid)
    z = jax.nn.sigmoid(h @ w2.T)                               # (B, C)
    f_fca = x * z[:, :, None, None]
    con = jax.nn.sigmoid(jnp.einsum("oc,bchw->bohw", wc, x))   # (B, 1, H, W)
    f_con = x * con
    return f_fca + f_con


if __name__ == "__main__":
    # Small shapes consistent with the module: reduction=16 requires
    # channel >= 16, so use C=32 -> mid_channel = 2.
    B, C, H, W = 2, 32, 16, 16
    reduction = 16
    mid = C // reduction

    # SFCA.__init__ scales the frequency indices by width // 8.
    fidx_u = [0, 1, 0, 1]
    fidx_v = [0, 0, 1, 1]
    fidx_u = [u * (W // 8) for u in fidx_u]
    fidx_v = [v * (W // 8) for v in fidx_v]
    dct_w = get_dct_weights(W, H, C, fidx_u, fidx_v)           # (C, H, W)

    key = jax.random.PRNGKey(0)
    k1, k2, k3, kx = jax.random.split(key, 4)
    w1 = jax.random.normal(k1, (mid, C), jnp.float32) * 0.1    # Linear(C, mid)
    w2 = jax.random.normal(k2, (C, mid), jnp.float32) * 0.1    # Linear(mid, C)
    wc = jax.random.normal(k3, (1, C), jnp.float32) * 0.1      # Conv2d(C, 1, 1)
    x = jax.random.normal(kx, (B, C, H, W), jnp.float32)

    out = jax.block_until_ready(sfca_apply(x, dct_w, w1, w2, wc))
    ref = jax.block_until_ready(sfca_reference(x, dct_w, w1, w2, wc))

    assert out.shape == (B, C, H, W) and out.dtype == x.dtype
    assert np.allclose(np.asarray(out), np.asarray(ref), atol=1e-5, rtol=1e-5)
    print("KERNEL_OK")
</pallas_src>

<mosaic_0001>
module attributes {stable_mosaic.version = 11 : i64} {
  func.func @kernel(%arg0: memref<2x32x256xf32, #tpu.memory_space<vmem>>, %arg1: memref<32x256xf32, #tpu.memory_space<vmem>>, %arg2: memref<72x128xf32, #tpu.memory_space<vmem>>, %arg3: memref<2x32x256xf32, #tpu.memory_space<vmem>>) attributes {dimension_semantics = [], scalar_prefetch = 0 : i64, scratch_operands = 0 : i64, tpu.core_type = #tpu.core_type<tc>} {
    %c0 = arith.constant 0 : index
    %c0_0 = arith.constant 0 : index
    %0 = vector.load %arg1[%c0, %c0_0] : memref<32x256xf32, #tpu.memory_space<vmem>>, vector<32x256xf32>
    %c0_1 = arith.constant 0 : index
    %c0_2 = arith.constant 0 : index
    %1 = vector.load %arg2[%c0_1, %c0_2] : memref<72x128xf32, #tpu.memory_space<vmem>>, vector<2x32xf32>
    %c8 = arith.constant 8 : index
    %c0_3 = arith.constant 0 : index
    %2 = vector.load %arg2[%c8, %c0_3] : memref<72x128xf32, #tpu.memory_space<vmem>>, vector<32x2xf32>
    %c40 = arith.constant 40 : index
    %c0_4 = arith.constant 0 : index
    %3 = vector.load %arg2[%c40, %c0_4] : memref<72x128xf32, #tpu.memory_space<vmem>>, vector<32x1xf32>
    %c0_5 = arith.constant 0 : index
    %c0_6 = arith.constant 0 : index
    %c0_7 = arith.constant 0 : index
    %4 = vector.load %arg0[%c0_5, %c0_6, %c0_7] : memref<2x32x256xf32, #tpu.memory_space<vmem>>, vector<1x32x256xf32>
    %5 = vector.shape_cast %4 : vector<1x32x256xf32> to vector<32x256xf32>
    %6 = arith.mulf %5, %0 : vector<32x256xf32>
    %cst = arith.constant dense<0.000000e+00> : vector<32xf32>
    %7 = vector.multi_reduction <add>, %6, %cst [1] : vector<32x256xf32> to vector<32xf32>
    %8 = vector.shape_cast %7 : vector<32xf32> to vector<32x1xf32>
    %c1 = arith.constant 1 : index
    %c0_8 = arith.constant 0 : index
    %c0_9 = arith.constant 0 : index
    %9 = vector.load %arg0[%c1, %c0_8, %c0_9] : memref<2x32x256xf32, #tpu.memory_space<vmem>>, vector<1x32x256xf32>
    %10 = vector.shape_cast %9 : vector<1x32x256xf32> to vector<32x256xf32>
    %11 = arith.mulf %10, %0 : vector<32x256xf32>
    %cst_10 = arith.constant dense<0.000000e+00> : vector<32xf32>
    %12 = vector.multi_reduction <add>, %11, %cst_10 [1] : vector<32x256xf32> to vector<32xf32>
    %13 = vector.shape_cast %12 : vector<32xf32> to vector<32x1xf32>
    %14 = tpu.concatenate %8, %13 in 1 : vector<32x1xf32>, vector<32x1xf32> -> vector<32x2xf32>
    %cst_11 = arith.constant dense<0.000000e+00> : vector<2x2xf32>
    %15 = tpu.matmul %1, %14, %cst_11 {dimension_numbers = #tpu.dot_dimension_numbers<[1], [0], [0], [1], [0, 0, 1, 1], [], []>} : vector<2x32xf32>, vector<32x2xf32>, vector<2x2xf32> -> vector<2x2xf32>
    %cst_12 = arith.constant 0.000000e+00 : f32
    %16 = vector.broadcast %cst_12 : f32 to vector<2x2xf32>
    %17 = arith.maximumf %15, %16 : vector<2x2xf32>
    %cst_13 = arith.constant dense<0.000000e+00> : vector<32x2xf32>
    %18 = tpu.matmul %2, %17, %cst_13 {dimension_numbers = #tpu.dot_dimension_numbers<[1], [0], [0], [1], [0, 0, 1, 1], [], []>} : vector<32x2xf32>, vector<2x2xf32>, vector<32x2xf32> -> vector<32x2xf32>
    %19 = arith.negf %18 : vector<32x2xf32>
    %20 = math.exp %19 : vector<32x2xf32>
    %cst_14 = arith.constant 1.000000e+00 : f32
    %21 = vector.broadcast %cst_14 : f32 to vector<32x2xf32>
    %22 = arith.addf %21, %20 : vector<32x2xf32>
    %23 = arith.divf %21, %22 : vector<32x2xf32>
    %24 = vector.broadcast %3 : vector<32x1xf32> to vector<32x256xf32>
    %25 = arith.mulf %5, %24 : vector<32x256xf32>
    %cst_15 = arith.constant dense<0.000000e+00> : vector<256xf32>
    %26 = vector.multi_reduction <add>, %25, %cst_15 [0] : vector<32x256xf32> to vector<256xf32>
    %27 = vector.shape_cast %26 : vector<256xf32> to vector<1x256xf32>
    %28 = arith.negf %27 : vector<1x256xf32>
    %29 = math.exp %28 : vector<1x256xf32>
    %cst_16 = arith.constant 1.000000e+00 : f32
    %30 = vector.broadcast %cst_16 : f32 to vector<1x256xf32>
    %31 = arith.addf %30, %29 : vector<1x256xf32>
    %32 = arith.divf %30, %31 : vector<1x256xf32>
    %33 = vector.extract_strided_slice %23 {offsets = [0, 0], sizes = [32, 1], strides = [1, 1]} : vector<32x2xf32> to vector<32x1xf32>
    %34 = vector.broadcast %33 : vector<32x1xf32> to vector<32x256xf32>
    %35 = vector.broadcast %32 : vector<1x256xf32> to vector<32x256xf32>
    %36 = arith.addf %34, %35 : vector<32x256xf32>
    %37 = arith.mulf %5, %36 : vector<32x256xf32>
    %c0_17 = arith.constant 0 : index
    %c0_18 = arith.constant 0 : index
    %c0_19 = arith.constant 0 : index
    %38 = vector.load %arg3[%c0_17, %c0_18, %c0_19] : memref<2x32x256xf32, #tpu.memory_space<vmem>>, vector<1x32x256xf32>
    %39 = vector.shape_cast %38 : vector<1x32x256xf32> to vector<32x256xf32>
    %40 = vector.shape_cast %37 : vector<32x256xf32> to vector<1x32x256xf32>
    tpu.vector_store %arg3[%c0_17, %c0_18, %c0_19], %40 {strides = array<i32>} : memref<2x32x256xf32, #tpu.memory_space<vmem>>, vector<1x32x256xf32>,
    %41 = vector.broadcast %3 : vector<32x1xf32> to vector<32x256xf32>
    %42 = arith.mulf %10, %41 : vector<32x256xf32>
    %cst_20 = arith.constant dense<0.000000e+00> : vector<256xf32>
    %43 = vector.multi_reduction <add>, %42, %cst_20 [0] : vector<32x256xf32> to vector<256xf32>
    %44 = vector.shape_cast %43 : vector<256xf32> to vector<1x256xf32>
    %45 = arith.negf %44 : vector<1x256xf32>
    %46 = math.exp %45 : vector<1x256xf32>
    %cst_21 = arith.constant 1.000000e+00 : f32
    %47 = vector.broadcast %cst_21 : f32 to vector<1x256xf32>
    %48 = arith.addf %47, %46 : vector<1x256xf32>
    %49 = arith.divf %47, %48 : vector<1x256xf32>
    %50 = vector.extract_strided_slice %23 {offsets = [0, 1], sizes = [32, 1], strides = [1, 1]} : vector<32x2xf32> to vector<32x1xf32>
    %51 = vector.broadcast %50 : vector<32x1xf32> to vector<32x256xf32>
    %52 = vector.broadcast %49 : vector<1x256xf32> to vector<32x256xf32>
    %53 = arith.addf %51, %52 : vector<32x256xf32>
    %54 = arith.mulf %10, %53 : vector<32x256xf32>
    %c1_22 = arith.constant 1 : index
    %c0_23 = arith.constant 0 : index
    %c0_24 = arith.constant 0 : index
    %55 = vector.load %arg3[%c1_22, %c0_23, %c0_24] : memref<2x32x256xf32, #tpu.memory_space<vmem>>, vector<1x32x256xf32>
    %56 = vector.shape_cast %55 : vector<1x32x256xf32> to vector<32x256xf32>
    %57 = vector.shape_cast %54 : vector<32x256xf32> to vector<1x32x256xf32>
    tpu.vector_store %arg3[%c1_22, %c0_23, %c0_24], %57 {strides = array<i32>} : memref<2x32x256xf32, #tpu.memory_space<vmem>>, vector<1x32x256xf32>,
    return
  }
}

</mosaic_0001>

<bundles_post_ra>
// kernel: tpu_custom_call.1
= control target key start
LH: loop header
LB: loop body
LE: loop exit
PB: predicated region body
PF: predicated region fallthrough
CT: control target
= control target key end

     0   :  { %8 = vsyncpa [#allocation3], 0  ;;  %s855_s0 = inlined_call_operand.hbm [shape: f32[2,32,256], index: 0, kind: input, shape index: {}]   ;;  %s856_s1 = inlined_call_operand.hbm [shape: f32[32,256], index: 1, kind: input, shape index: {}]   ;;  %s857_s2 = inlined_call_operand.hbm [shape: f32[72,128], index: 2, kind: input, shape index: {}]   ;;  %s858_s3 = inlined_call_operand.hbm [shape: f32[2,32,256], index: 3, kind: output, shape index: {}]  }
   0x1   :  { %9 = vsyncpa [#allocation6], 0 }
   0x2   :  { %10 = vsyncpa [#allocation4], 0  ;;  %s714_s12 = smov [#allocation5]   ;;  %s715_s14 = smov [#allocation2]  }
   0x3   :  { %s28_s13 = sshll.u32 %s714_s12, 4  ;;  %s16_s15 = sshll.u32 %s715_s14, 4  ;;  %s29_s13 = int_to_ptr.vmem [resolvable:$true] %s28_s13  ;;  %s17_s15 = int_to_ptr.vmem [resolvable:$true] %s16_s15 }
   0x4   :  { %s636_s16 = scalar_lea.vmem %s29_s13, 1024  ;;  %p641_p1 = scmp.lt.s32.totalorder %s29_s13, %s29_s13 }
   0x5   :  { %p637_p0 = scmp.ne.s32.totalorder %s29_s13, %s636_s16  ;;  %p642_p2 = scmp.lt.s32.totalorder %s636_s16, %s636_s16 }
   0x7   :  { %p643_p3 = por %p642_p2, %p641_p1 }
   0x9   :  { %p644_p4 = pnand %p643_p3, %p637_p0 }
   0xb   :  { %647 = shalt.err (!%p644_p4)
}
   0xc   :  { %s716_s17 = smov 256   ;;  %s717_s18 = smov 16  }
   0xd   :  { %34 = dma.hbm_to_vmem [thread:$0]  %s856_s1, 1024, %s29_s13, [#allocation6], %s716_s17, %s716_s17, %s717_s18  }
   0xe   :  { %s656_s21 = scalar_lea.vmem %s17_s15, 2048  ;;  %p661_p6 = scmp.lt.s32.totalorder %s17_s15, %s17_s15 }
   0xf   :  { %p657_p5 = scmp.ne.s32.totalorder %s17_s15, %s656_s21  ;;  %p662_p7 = scmp.lt.s32.totalorder %s656_s21, %s656_s21 }
  0x11   :  { %p663_p8 = por %p662_p7, %p661_p6 }
  0x13   :  { %p664_p9 = pnand %p663_p8, %p657_p5 }
  0x15   :  { %667 = shalt.err (!%p664_p9)
}
  0x16   :  { %22 = dma.hbm_to_vmem [thread:$0]  %s855_s0, 2048, %s17_s15, [#allocation3], %s716_s17, %s716_s17, %s717_s18  }
  0x17   :  { %s718_s24 = smov [#allocation7]  }
  0x18   :  { %s40_s25 = sshll.u32 %s718_s24, 4  ;;  %s41_s25 = int_to_ptr.vmem [resolvable:$true] %s40_s25 }
  0x19   :  { %s676_s26 = scalar_lea.vmem %s41_s25, 1152  ;;  %p681_p11 = scmp.lt.s32.totalorder %s41_s25, %s41_s25 }
  0x1a   :  { %p677_p10 = scmp.ne.s32.totalorder %s41_s25, %s676_s26  ;;  %p682_p12 = scmp.lt.s32.totalorder %s676_s26, %s676_s26 }
  0x1c   :  { %p683_p13 = por %p682_p12, %p681_p11 }
  0x1e   :  { %p684_p0 = pnand %p683_p13, %p677_p10 }
  0x20   :  { %687 = shalt.err (!%p684_p0)
}
  0x21   :  { %s719_s1 = smov 128   ;;  %s720_s27 = smov 8  }
  0x22   :  { %46 = dma.hbm_to_vmem [thread:$0]  %s857_s2, 1152, %s41_s25, [#allocation6], %s719_s1, %s719_s1, %s720_s27  }
  0x23   :  { %708 = dma.done.wait [#allocation3], 2048  }
  0x24   :  { %709 = vsyncadd [#allocation3], 4294965248 }
  0x25   :  { %710 = dma.done.wait [#allocation6], 2176  }
  0x26   :  { %711 = vsyncadd [#allocation6], 4294965120  ;;  %v62_v0 = vld [vmem:[#allocation5 + $0x30] sm:$0xff]  ;;  %v63_v1 = vld [vmem:[#allocation5 + $0x38] sm:$0xff]  ;;  %v721_v48 = vmov 0.0   ;;  %vm722_vm0 = vmmov 0  }
  0x27   :  { %v761_v2 = vld [vmem:[#allocation2 + $0x30] sm:$0xff]  ;;  %v763_v3 = vld [vmem:[#allocation2 + $0x38] sm:$0xff]  ;;  %v60_v5 = vld [vmem:[#allocation5 + $0x20] sm:$0xff]  ;;  %559 = vmatprep.subr.mxu0 %v721_v48  ;;  %567 = vmatprep.mubr.msk.f32.mxu0 %vm722_vm0, %v721_v48  ;;  %vm130_vm1 = vcmask 7168   ;;  %vm135_vm2 = vcmask 261120   ;;  %vm210_vm3 = vcmask 15360  }
  0x28   :  { %v87_v4 = vmul.f32 %v761_v2, %v62_v0  ;;  %v61_v6 = vld [vmem:[#allocation5 + $0x28] sm:$0xff]  ;;  %v88_v7 = vmul.f32 %v763_v3, %v63_v1  ;;  %v767_v8 = vld [vmem:[#allocation2 + $0x20] sm:$0xff]  ;;  %v771_v10 = vld [vmem:[#allocation2 + $0x70] sm:$0xff]  ;;  %vm223_vm4 = vcmask 1041408   ;;  %s725_s0 = smov [#allocation8]  }
  0x29   :  { %v769_v9 = vld [vmem:[#allocation2 + $0x28] sm:$0xff]  ;;  %v85_v11 = vmul.f32 %v767_v8, %v60_v5  ;;  %v775_v13 = vld [vmem:[#allocation2 + $0x78] sm:$0xff]  ;;  %v116_v14 = vmul.f32 %v771_v10, %v62_v0  ;;  %v778_v15 = vld [vmem:[#allocation2 + $0x60] sm:$0xff]  ;;  %s522_s2 = sshll.u32 %s725_s0, 4  ;;  %s523_s2 = int_to_ptr.vmem [resolvable:$true] %s522_s2 }
  0x2a   :  { %v86_v12 = vmul.f32 %v769_v9, %v61_v6  ;;  %v780_v16 = vld [vmem:[#allocation2 + $0x68] sm:$0xff]  ;;  %v98_v17 = vadd.f32 %v88_v7, %v87_v4  ;;  %v117_v18 = vmul.f32 %v775_v13, %v63_v1  ;;  %v114_v19 = vmul.f32 %v778_v15, %v60_v5  ;;  %v58_v21 = vld [vmem:[#allocation5 + $0x10] sm:$0xff]  ;;  %v59_v22 = vld [vmem:[#allocation5 + $0x18] sm:$0xff]  ;;  %s688_s30 = scalar_lea.vmem %s523_s2, 2048  ;;  %p693_p2 = scmp.lt.s32.totalorder %s523_s2, %s523_s2 }
  0x2b   :  { %v115_v20 = vmul.f32 %v780_v16, %v61_v6  ;;  %v785_v23 = vld [vmem:[#allocation2 + $0x50] sm:$0xff]  ;;  %v787_v25 = vld [vmem:[#allocation2 + $0x58] sm:$0xff]  ;;  %v56_v30 = vld [vmem:[#allocation5] sm:$0xff]  ;;  %v723_v1 = vmov 0   ;;  %p689_p1 = scmp.ne.s32.totalorder %s523_s2, %s688_s30  ;;  %p694_p3 = scmp.lt.s32.totalorder %s688_s30, %s688_s30 }
  0x2c   :  { %v95_v24 = vadd.f32 %v86_v12, %v85_v11  ;;  %v789_v26 = vld [vmem:[#allocation2 + $0x10] sm:$0xff]  ;;  %v791_v27 = vld [vmem:[#allocation2 + $0x18] sm:$0xff]  ;;  %99 = vadd.xlane.f32.xlu0 %v98_v17  ;;  %v127_v28 = vadd.f32 %v117_v18, %v116_v14  ;;  %v112_v32 = vmul.f32 %v785_v23, %v58_v21  ;;  %v113_v33 = vmul.f32 %v787_v25, %v59_v22  ;;  %v57_v35 = vld [vmem:[#allocation5 + $0x8] sm:$0xff] }
  0x2d   :  { %v83_v29 = vmul.f32 %v789_v26, %v58_v21  ;;  %v124_v31 = vadd.f32 %v115_v20, %v114_v19  ;;  %v84_v34 = vmul.f32 %v791_v27, %v59_v22  ;;  %v797_v36 = vld [vmem:[#allocation2] sm:$0xff]  ;;  %v799_v37 = vld [vmem:[#allocation2 + $0x8] sm:$0xff]  ;;  %v70_v63 = vld [vmem:[#allocation7 + $0x30] sm:$0xff]  ;;  %591 = vset.pattern.permute.xlu1 %v723_v1  ;;  %590 = vset.pattern.permute.xlu0 %v723_v1  ;;  %v724_v18 = vmov 1   ;;  %p695_p4 = por %p694_p3, %p693_p2 }
  0x2e   :  { %96 = vadd.xlane.f32.xlu1 %v95_v24  ;;  %v801_v38 = vld [vmem:[#allocation2 + $0x40] sm:$0xff]  ;;  %v803_v39 = vld [vmem:[#allocation2 + $0x48] sm:$0xff]  ;;  %v81_v41 = vmul.f32 %v797_v36, %v56_v30  ;;  %v82_v42 = vmul.f32 %v799_v37, %v57_v35  ;;  %v121_v43 = vadd.f32 %v113_v33, %v112_v32  ;;  %v71_v4 = vld [vmem:[#allocation7 + $0x38] sm:$0xff] }
  0x2f   :  { %v92_v40 = vadd.f32 %v84_v34, %v83_v29  ;;  %v110_v44 = vmul.f32 %v801_v38, %v56_v30  ;;  %v111_v45 = vmul.f32 %v803_v39, %v57_v35  ;;  %v64_v60 = vld [vmem:[#allocation7] sm:$0x3]  ;;  %v65_v62 = vld [vmem:[#allocation7 + $0x8] sm:$0xff]  ;;  %v66_v12 = vld [vmem:[#allocation7 + $0x10] sm:$0xff]  ;;  %p696_p5 = pnand %p695_p4, %p689_p1 }
  0x30   :  { %128 = vadd.xlane.f32.xlu0 %v127_v28  ;;  %v89_v46 = vadd.f32 %v82_v42, %v81_v41  ;;  %572 = vmatprep.mubr.msk.f32.mxu1 %vm210_vm3, %v65_v62  ;;  %v69_v0 = vld [vmem:[#allocation7 + $0x28] sm:$0xff]  ;;  %v72_v5 = vld [vmem:[#allocation7 + $0x40] sm:$0xff]  ;;  %v67_v14 = vld [vmem:[#allocation7 + $0x18] sm:$0xff] }
  0x31   :  { %v118_v47 = vadd.f32 %v111_v45, %v110_v44  ;;  %v68_v17 = vld [vmem:[#allocation7 + $0x20] sm:$0xff] }
  0x32   :  { %125 = vadd.xlane.f32.xlu1 %v124_v31 }
  0x34   :  { %93 = vadd.xlane.f32.xlu0 %v92_v40 }
  0x36   :  { %122 = vadd.xlane.f32.xlu1 %v121_v43 }
  0x38   :  { %90 = vadd.xlane.f32.xlu0 %v89_v46 }
  0x3a   :  { %119 = vadd.xlane.f32.xlu1 %v118_v47 }
  0x4b   :  { %343 = vperm.xlu1 %591, %v70_v63  }
  0x4e   :  { %338 = vperm.xlu0 %590, %v69_v0  }
  0x4f   :  { %348 = vperm.xlu1 %591, %v71_v4  }
  0x52   :  { %594 = vset.pattern.permute.xlu0 %v724_v18 }
  0x53   :  { %353 = vperm.xlu1 %591, %v72_v5  }
  0xb5   :  { %v100_v49 = vpop.xlane.xlu0 %99 }
  0xb7   :  { %v97_v50 = vpop.xlane.xlu1 %96 }
  0xb9   :  { %v129_v51 = vpop.xlane.xlu0 %128 }
  0xba   :  { %v134_v53 = vsel %vm130_vm1, %v100_v49, %v129_v51 }
  0xbb   :  { %v126_v52 = vpop.xlane.xlu1 %125  ;;  %560 = vmatpush3.msra.mxu0 %v134_v53 }
  0xbc   :  { %561 = vmatprep.subr.mxu0 %v721_v48  ;;  %v133_v54 = vsel %vm130_vm1, %v97_v50, %v126_v52 }
  0xbd   :  { %562 = vmatpush3.msra.mxu0 %v133_v54  ;;  %v94_v55 = vpop.xlane.xlu0 %93 }
  0xbe   :  { %563 = vmatprep.subr.mxu0 %v721_v48 }
  0xbf   :  { %v123_v56 = vpop.xlane.xlu1 %122 }
  0xc0   :  { %v132_v57 = vsel %vm130_vm1, %v94_v55, %v123_v56 }
  0xc1   :  { %564 = vmatpush3.msra.mxu0 %v132_v57  ;;  %v91_v58 = vpop.xlane.xlu0 %90 }
  0xc2   :  { %565 = vmatprep.subr.mxu0 %v721_v48 }
  0xc3   :  { %v120_v59 = vpop.xlane.xlu1 %119 }
  0xc4   :  { %v131_v61 = vsel %vm130_vm1, %v91_v58, %v120_v59 }
  0xc5   :  { %566 = vmatpush3.msra.mxu0 %v131_v61 }
  0xc6   :  { %568 = vmatmul.mubr.msk.f32.vlgmr.msra.gmra.mxu0 %vm135_vm2, %v64_v60 }
  0xc7   :  { %v344_v47 = vpop.permute.xlu1 %343 }
  0xc8   :  { %v358_v50 = vmul.f32 %v344_v47, %v789_v26  ;;  %v359_v52 = vmul.f32 %v344_v47, %v791_v27  ;;  %v440_v54 = vmul.f32 %v344_v47, %v785_v23  ;;  %v441_v56 = vmul.f32 %v344_v47, %v787_v25 }
  0xc9   :  { %v339_v48 = vpop.permute.xlu0 %338 }
  0xca   :  { %v356_v51 = vmul.f32 %v339_v48, %v797_v36  ;;  %v357_v53 = vmul.f32 %v339_v48, %v799_v37  ;;  %v438_v55 = vmul.f32 %v339_v48, %v801_v38  ;;  %v439_v57 = vmul.f32 %v339_v48, %v803_v39 }
  0xcb   :  { %v349_v49 = vpop.permute.xlu1 %348 }
  0xcc   :  { %v360_v58 = vmul.f32 %v349_v49, %v767_v8  ;;  %v364_v59 = vadd.f32 %v358_v50, %v356_v51  ;;  %v361_v60 = vmul.f32 %v349_v49, %v769_v9  ;;  %v373_v61 = vadd.f32 %v359_v52, %v357_v53 }
  0xcd   :  { %v442_v63 = vmul.f32 %v349_v49, %v778_v15  ;;  %v446_v0 = vadd.f32 %v440_v54, %v438_v55  ;;  %v455_v4 = vadd.f32 %v441_v56, %v439_v57 }
  0xcf   :  { %v354_v62 = vpop.permute.xlu1 %353 }
  0xd0   :  { %v362_v5 = vmul.f32 %v354_v62, %v761_v2 }
 0x186   :  { %v205_v6 = vpop.f32.mrf.mxu0 }
 0x187   :  { %v209_v7 = vmax.f32 %v205_v6, 0.0  ;;  %v365_v6 = vadd.f32 %v364_v59, %v360_v58 }
 0x188   :  { %v569_v11 = vpop.f32.mrf.mxu0 }
 0x189   :  { %570 = vmatprep.subr.msk.mxu1 %vm223_vm4, %v209_v7  ;;  %v374_v11 = vadd.f32 %v373_v61, %v361_v60 }
 0x18a   :  { %571 = vmatpush3.msk.msra.mxu1 %vm223_vm4, %v209_v7  ;;  %v363_v7 = vmul.f32 %v354_v62, %v763_v3 }
 0x18b   :  { %573 = vmatmul.mubr.msk.f32.vlgmr.msra.gmra.mxu1 %vm210_vm3, %v66_v12  ;;  %v444_v12 = vmul.f32 %v354_v62, %v771_v10 }
 0x18c   :  { %575 = vmatprep.mubr.msk.f32.mxu1 %vm210_vm3, %v67_v14  ;;  %v447_v14 = vadd.f32 %v446_v0, %v442_v63 }
 0x18f   :  { %576 = vmatmul.mubr.msk.f32.gmra.mxu1 %vm210_vm3, %v68_v17  ;;  %v445_v17 = vmul.f32 %v354_v62, %v775_v13 }
 0x24b   :  { %v574_v19 = vpop.f32.mrf.mxu1 }
 0x24c   :  { %v542_v20 = vmul.f32 -1.442695, %v574_v19  ;;  %v366_v19 = vadd.f32 %v365_v6, %v362_v5 }
 0x24d   :  { %v293_v21 = vpop.f32.mrf.mxu1 }
 0x24e   :  { %596 = vpow2.f32 %v542_v20  ;;  %v541_v22 = vmul.f32 -1.442695, %v293_v21  ;;  %v375_v20 = vadd.f32 %v374_v11, %v363_v7  ;;  %v448_v21 = vadd.f32 %v447_v14, %v444_v12 }
 0x24f   :  { %v577_v24 = vpop.f32.mrf.mxu1 }
 0x250   :  { %598 = vpow2.f32 %v541_v22  ;;  %v544_v28 = vmul.f32 -1.442695, %v577_v24  ;;  %v367_v24 = vrot.slane %v366_v19, 4 }
 0x251   :  { %v303_v29 = vpop.f32.mrf.mxu1 }
 0x252   :  { %600 = vpow2.f32 %v544_v28  ;;  %v543_v30 = vmul.f32 -1.442695, %v303_v29  ;;  %v376_v28 = vrot.slane %v375_v20, 4  ;;  %v449_v29 = vrot.slane %v448_v21, 4 }
 0x254   :  { %602 = vpow2.f32 %v543_v30 }
 0x25b   :  { %v597_v31 = vpop.eup %596 }
 0x25c   :  { %v325_v32 = vadd.f32 1.0, %v597_v31  ;;  %v368_v31 = vadd.f32 %v367_v24, %v366_v19 }
 0x25d   :  { %v599_v33 = vpop.eup %598 }
 0x25e   :  { %604 = vrcp.f32 %v325_v32  ;;  %v324_v34 = vadd.f32 1.0, %v599_v33  ;;  %v377_v32 = vadd.f32 %v376_v28, %v375_v20  ;;  %v450_v33 = vadd.f32 %v449_v29, %v448_v21 }
 0x25f   :  { %v601_v35 = vpop.eup %600 }
 0x260   :  { %606 = vrcp.f32 %v324_v34  ;;  %v327_v40 = vadd.f32 1.0, %v601_v35  ;;  %v369_v35 = vrot.slane %v368_v31, 2 }
 0x261   :  { %v603_v41 = vpop.eup %602 }
 0x262   :  { %608 = vrcp.f32 %v327_v40  ;;  %v326_v43 = vadd.f32 1.0, %v603_v41  ;;  %v378_v40 = vrot.slane %v377_v32, 2  ;;  %v451_v41 = vrot.slane %v450_v33, 2 }
 0x264   :  { %610 = vrcp.f32 %v326_v43  ;;  %v370_v43 = vadd.f32 %v369_v35, %v368_v31 }
 0x266   :  { %v371_v47 = vrot.slane %v370_v43, 1 }
 0x268   :  { %v372_v51 = vadd.f32 %v371_v47, %v370_v43 }
 0x26a   :  { %v545_v55 = vmul.f32 -1.442695, %v372_v51 }
 0x26b   :  { %v605_v42 = vpop.eup %604 }
 0x26c   :  { %481 = vperm.xlu0 %594, %v605_v42   ;;  %401 = vperm.xlu1 %591, %v605_v42   ;;  %612 = vpow2.f32 %v545_v55 }
 0x26d   :  { %v607_v44 = vpop.eup %606 }
 0x26f   :  { %v609_v45 = vpop.eup %608 }
 0x270   :  { %396 = vperm.xlu1 %591, %v607_v44  }
 0x271   :  { %v611_v46 = vpop.eup %610 }
 0x274   :  { %592 = vset.pattern.permute.xlu1 %v724_v18 }
 0x275   :  { %477 = vperm.xlu1 %592, %v607_v44   ;;  %v379_v44 = vadd.f32 %v378_v40, %v377_v32 }
 0x277   :  { %v380_v48 = vrot.slane %v379_v44, 1 }
 0x279   :  { %593 = vset.pattern.permute.xlu1 %v723_v1  ;;  %v443_v1 = vmul.f32 %v349_v49, %v780_v16  ;;  %v381_v52 = vadd.f32 %v380_v48, %v379_v44  ;;  %v613_v59 = vpop.eup %612 }
 0x27a   :  { %411 = vperm.xlu1 %593, %v609_v45   ;;  %v388_v63 = vadd.f32 1.0, %v613_v59 }
 0x27b   :  { %v546_v56 = vmul.f32 -1.442695, %v381_v52 }
 0x27d   :  { %614 = vpow2.f32 %v546_v56 }
 0x27e   :  { %406 = vperm.xlu1 %593, %v611_v46  }
 0x282   :  { %595 = vset.pattern.permute.xlu1 %v724_v18  ;;  %v456_v18 = vadd.f32 %v455_v4, %v443_v1 }
 0x283   :  { %485 = vperm.xlu1 %595, %v611_v46  }
 0x284   :  { %v457_v22 = vadd.f32 %v456_v18, %v445_v17 }
 0x286   :  { %v458_v30 = vrot.slane %v457_v22, 4 }
 0x287   :  { %489 = vperm.xlu1 %595, %v609_v45   ;;  %v452_v45 = vadd.f32 %v451_v41, %v450_v33 }
 0x288   :  { %v459_v34 = vadd.f32 %v458_v30, %v457_v22 }
 0x289   :  { %v453_v49 = vrot.slane %v452_v45, 1 }
 0x28a   :  { %v460_v42 = vrot.slane %v459_v34, 2  ;;  %v615_v60 = vpop.eup %614 }
 0x28b   :  { %v454_v53 = vadd.f32 %v453_v49, %v452_v45  ;;  %v389_v0 = vadd.f32 1.0, %v615_v60 }
 0x28c   :  { %v461_v46 = vadd.f32 %v460_v42, %v459_v34 }
 0x28d   :  { %v547_v57 = vmul.f32 -1.442695, %v454_v53 }
 0x28e   :  { %v462_v50 = vrot.slane %v461_v46, 1 }
 0x28f   :  { %616 = vpow2.f32 %v547_v57 }
 0x290   :  { %v463_v54 = vadd.f32 %v462_v50, %v461_v46 }
 0x292   :  { %v548_v58 = vmul.f32 -1.442695, %v463_v54 }
 0x294   :  { %618 = vpow2.f32 %v548_v58 }
 0x295   :  { %620 = vrcp.f32 %v388_v63 }
 0x296   :  { %622 = vrcp.f32 %v389_v0 }
 0x29c   :  { %v617_v61 = vpop.eup %616 }
 0x29d   :  { %v470_v1 = vadd.f32 1.0, %v617_v61 }
 0x29f   :  { %624 = vrcp.f32 %v470_v1 }
 0x2a1   :  { %v619_v62 = vpop.eup %618 }
 0x2a2   :  { %v471_v4 = vadd.f32 1.0, %v619_v62  ;;  %v621_v5 = vpop.eup %620 }
 0x2a3   :  { %v623_v6 = vpop.eup %622 }
 0x2a4   :  { %626 = vrcp.f32 %v471_v4 }
 0x2ac   :  { %v625_v7 = vpop.eup %624 }
 0x2b1   :  { %v627_v11 = vpop.eup %626 }
 0x2e7   :  { %v402_v12 = vpop.permute.xlu1 %401  ;;  %v482_v14 = vpop.permute.xlu0 %481 }
 0x2e8   :  { %v416_v17 = vadd.f32 %v621_v5, %v402_v12  ;;  %v417_v18 = vadd.f32 %v623_v6, %v402_v12  ;;  %v494_v19 = vadd.f32 %v625_v7, %v482_v14  ;;  %v495_v20 = vadd.f32 %v627_v11, %v482_v14 }
 0x2ea   :  { %v424_v21 = vmul.f32 %v416_v17, %v789_v26  ;;  %v425_v22 = vmul.f32 %v417_v18, %v791_v27  ;;  %v502_v24 = vmul.f32 %v494_v19, %v785_v23  ;;  %v503_v28 = vmul.f32 %v495_v20, %v787_v25 }
 0x2eb   :  { %v397_v29 = vpop.permute.xlu1 %396 }
 0x2ec   :  { %432 = vst [vmem:[#allocation8 + $0x10] sm:$0xff] %v424_v21  ;;  %433 = vst [vmem:[#allocation8 + $0x18] sm:$0xff] %v425_v22  ;;  %v414_v30 = vadd.f32 %v621_v5, %v397_v29  ;;  %v415_v31 = vadd.f32 %v623_v6, %v397_v29 }
 0x2ed   :  { %511 = vst [vmem:[#allocation8 + $0x50] sm:$0xff] %v502_v24  ;;  %512 = vst [vmem:[#allocation8 + $0x58] sm:$0xff] %v503_v28 }
 0x2ee   :  { %v422_v32 = vmul.f32 %v414_v30, %v797_v36  ;;  %v423_v33 = vmul.f32 %v415_v31, %v799_v37 }
 0x2f0   :  { %430 = vst [vmem:[#allocation8] sm:$0xff] %v422_v32  ;;  %431 = vst [vmem:[#allocation8 + $0x8] sm:$0xff] %v423_v33  ;;  %v478_v26 = vpop.permute.xlu1 %477 }
 0x2f1   :  { %v492_v34 = vadd.f32 %v625_v7, %v478_v26  ;;  %v493_v27 = vadd.f32 %v627_v11, %v478_v26 }
 0x2f3   :  { %v500_v23 = vmul.f32 %v492_v34, %v801_v38  ;;  %v501_v25 = vmul.f32 %v493_v27, %v803_v39 }
 0x2f5   :  { %509 = vst [vmem:[#allocation8 + $0x40] sm:$0xff] %v500_v23  ;;  %510 = vst [vmem:[#allocation8 + $0x48] sm:$0xff] %v501_v25  ;;  %v412_v35 = vpop.permute.xlu1 %411 }
 0x2f6   :  { %v420_v40 = vadd.f32 %v621_v5, %v412_v35  ;;  %v421_v41 = vadd.f32 %v623_v6, %v412_v35 }
 0x2f8   :  { %v428_v42 = vmul.f32 %v420_v40, %v761_v2  ;;  %v429_v36 = vmul.f32 %v421_v41, %v763_v3 }
 0x2f9   :  { %v407_v43 = vpop.permute.xlu1 %406 }
 0x2fa   :  { %436 = vst [vmem:[#allocation8 + $0x30] sm:$0xff] %v428_v42  ;;  %437 = vst [vmem:[#allocation8 + $0x38] sm:$0xff] %v429_v36  ;;  %v418_v37 = vadd.f32 %v621_v5, %v407_v43  ;;  %v419_v44 = vadd.f32 %v623_v6, %v407_v43 }
 0x2fc   :  { %v426_v45 = vmul.f32 %v418_v37, %v767_v8  ;;  %v427_v38 = vmul.f32 %v419_v44, %v769_v9 }
 0x2fe   :  { %434 = vst [vmem:[#allocation8 + $0x20] sm:$0xff] %v426_v45  ;;  %435 = vst [vmem:[#allocation8 + $0x28] sm:$0xff] %v427_v38  ;;  %v486_v39 = vpop.permute.xlu1 %485 }
 0x2ff   :  { %v496_v46 = vadd.f32 %v625_v7, %v486_v39  ;;  %v497_v47 = vadd.f32 %v627_v11, %v486_v39 }
 0x301   :  { %v504_v48 = vmul.f32 %v496_v46, %v778_v15  ;;  %v505_v2 = vmul.f32 %v497_v47, %v780_v16 }
 0x302   :  { %v490_v49 = vpop.permute.xlu1 %489 }
 0x303   :  { %513 = vst [vmem:[#allocation8 + $0x60] sm:$0xff] %v504_v48  ;;  %514 = vst [vmem:[#allocation8 + $0x68] sm:$0xff] %v505_v2  ;;  %v498_v3 = vadd.f32 %v625_v7, %v490_v49  ;;  %v499_v50 = vadd.f32 %v627_v11, %v490_v49 }
 0x305   :  { %v506_v8 = vmul.f32 %v498_v3, %v771_v10  ;;  %v507_v9 = vmul.f32 %v499_v50, %v775_v13 }
 0x307   :  { %515 = vst [vmem:[#allocation8 + $0x70] sm:$0xff] %v506_v8  ;;  %516 = vst [vmem:[#allocation8 + $0x78] sm:$0xff] %v507_v9 }
 0x308   :  { %699 = shalt.err (!%p696_p5)
}
 0x309   :  { %528 = dma.vmem_to_hbm [thread:$0]  %s523_s2, 2048, %s858_s3, [#allocation4], %s716_s17, %s716_s17, %s717_s18  }
 0x30a   :  { %712 = dma.done.wait [#allocation4], 2048  }
 0x30b   :  { %713 = vsyncadd [#allocation4], 4294965248 }
 0x30c   :  { %532 = vsyncpa [#allocation3], 1 }
 0x30d   :  { %533 = vsyncpa [#allocation6], 1 }
 0x30e   :  { %534 = vsyncpa [#allocation4], 1 }

</bundles_post_ra>
